<compile_context>
chip_gen: v7x
topology: tpu7x:2x2x1
jax: 0.10.0
libtpu: 0.0.40
codegen_flags: <defaults>
</compile_context>

<pallas_src>
import math
import jax
import jax.numpy as jnp
from jax.experimental import pallas as pl
from jax.experimental.pallas import tpu as pltpu


def _round_up(x, m):
    return ((x + m - 1) // m) * m


_GELU_C0 = 0.7978845608028654            # sqrt(2/pi)
_GELU_C1 = _GELU_C0 * 0.044715           # folded constant


def _gelu_tanh(h):
    # 0.5*h*(1+tanh(sqrt(2/pi)*(h+0.044715*h^3))) with constants folded:
    u = h * h
    t = jnp.tanh(h * (_GELU_C0 + _GELU_C1 * u))
    return h * (0.5 + 0.5 * t)


def _mlp_kernel_resident(x_ref, w1_ref, b1_ref, w2_ref, b2_ref, o_ref):
    """Weights-resident path: one (TM, C) row tile, full hidden dim per step.

    x_ref:  (TM, C_pad)   bf16 input rows
    w1_ref: (C_pad, H_pad) bf16 c_fc weight (resident across the grid)
    b1_ref: (1, H_pad)     f32 c_fc bias
    w2_ref: (H_pad, C_pad) bf16 c_proj weight (resident)
    b2_ref: (1, C_pad)     f32 c_proj bias
    o_ref:  (TM, C_pad)    output rows
    """
    h = jnp.dot(x_ref[...], w1_ref[...],
                preferred_element_type=jnp.float32) + b1_ref[...]
    g = _gelu_tanh(h)
    o_ref[...] = (jnp.dot(g.astype(jnp.bfloat16), w2_ref[...],
                          preferred_element_type=jnp.float32)
                  + b2_ref[...]).astype(o_ref.dtype)


def _mlp_kernel_tiled(x_ref, w1_ref, b1_ref, w2_ref, b2_ref, o_ref, acc_ref):
    """H-tiled reduction path (weights too large for VMEM residency).

    x_ref:  (TM, C_pad)  bf16 input rows (resident across the H axis)
    w1_ref: (C_pad, TH)  bf16 c_fc weight column slice
    b1_ref: (1, TH)      f32 c_fc bias slice
    w2_ref: (TH, C_pad)  bf16 c_proj weight row slice
    b2_ref: (1, C_pad)   f32 c_proj bias
    o_ref:  (TM, C_pad)  output rows
    acc_ref:(TM, C_pad)  f32 accumulator scratch (persists across the H axis)
    """
    j = pl.program_id(1)

    @pl.when(j == 0)
    def _():
        acc_ref[...] = jnp.zeros_like(acc_ref)

    h = jnp.dot(x_ref[...], w1_ref[...],
                preferred_element_type=jnp.float32) + b1_ref[...]
    g = _gelu_tanh(h)
    acc_ref[...] += jnp.dot(g.astype(jnp.bfloat16), w2_ref[...],
                            preferred_element_type=jnp.float32)

    @pl.when(j == pl.num_programs(1) - 1)
    def _():
        o_ref[...] = (acc_ref[...] + b2_ref[...]).astype(o_ref.dtype)


def _vmem_capacity_bytes():
    try:
        info = pltpu.get_tpu_info()
        cap = getattr(info, "vmem_capacity_bytes", None)
        if cap:
            return int(cap)
    except Exception:
        pass
    return 64 * 1024 * 1024  # conservative: v7x per-core VMEM


def prepare_mlp_params(w1, b1, w2, b2):
    """One-time pad to 128-aligned lane dims + bf16 cast (hoisted out of the call)."""
    C, H = w1.shape
    C_pad = _round_up(C, 128)
    H_pad = _round_up(H, 128)
    w1p = jnp.pad(w1, ((0, C_pad - C), (0, H_pad - H))).astype(jnp.bfloat16)
    b1p = jnp.pad(b1, (0, H_pad - H)).reshape(1, H_pad).astype(jnp.float32)
    w2p = jnp.pad(w2, ((0, H_pad - H), (0, C_pad - C))).astype(jnp.bfloat16)
    b2p = jnp.pad(b2, (0, C_pad - C)).reshape(1, C_pad).astype(jnp.float32)
    return dict(w1=w1p, b1=b1p, w2=w2p, b2=b2p, C=C, H=H, C_pad=C_pad, H_pad=H_pad)


def mlp_pallas(x, params, *, tm_max=512, th_max=2048):
    """x: (B, T, C) f32/bf16; params: output of prepare_mlp_params."""
    w1p, b1p, w2p, b2p = params["w1"], params["b1"], params["w2"], params["b2"]
    C, H = params["C"], params["H"]
    C_pad, H_pad = params["C_pad"], params["H_pad"]

    B, T, _ = x.shape
    M = B * T
    out_dtype = x.dtype
    out_isize = jnp.dtype(out_dtype).itemsize

    vmem_cap = _vmem_capacity_bytes()
    # Generation-aware budget: ~40 MiB on v7x (64 MiB/TC), ~104 MiB on v5e/v6e (128 MiB).
    budget = max(vmem_cap - 24 * 1024 * 1024, 32 * 1024 * 1024)

    # ----- row-tile selection (lane/sublane aligned; bf16 x needs >=16 sublanes) -----
    tm_align = 128 if M >= 128 else 16
    TM = min(tm_max, _round_up(M, tm_align))
    # Give the second v7x TensorCore work on small batches: aim for >= 2 row tiles.
    if _round_up(M, TM) // TM < 2 and TM >= 2 * tm_align:
        TM = _round_up(-(-M // 2), tm_align)

    # Conservative VMEM accounting (assume everything Pallas streams is double-buffered).
    def need_resident(tm):
        w = 2 * (C_pad * H_pad + H_pad * C_pad) * 2          # w1 + w2, bf16
        b = 2 * (H_pad + C_pad) * 4                          # biases, f32
        xo = 2 * tm * C_pad * 2 + 2 * tm * C_pad * out_isize  # x (bf16) + out tiles
        inter = 2 * tm * H_pad * 4                           # h / gelu f32 intermediates
        return w + b + xo + inter

    def need_tiled(tm, th):
        w = 2 * (C_pad * th + th * C_pad) * 2
        b = 2 * (th + C_pad) * 4
        xo = 2 * tm * C_pad * 2 + 2 * tm * C_pad * out_isize
        acc = tm * C_pad * 4
        inter = 2 * tm * th * 4
        return w + b + xo + acc + inter

    # ----- resident-weights fast path if it fits, else H-tiled reduction -----
    TM_res = TM
    while need_resident(TM_res) > budget and TM_res > tm_align:
        TM_res = max(tm_align, _round_up(TM_res // 2, tm_align))
    use_resident = need_resident(TM_res) <= budget

    if use_resident:
        TM = TM_res
        TH = H_pad
        vmem_need = need_resident(TM)
    else:
        # TH: largest 128-multiple divisor of H_pad that is <= th_max and fits budget.
        h_units = H_pad // 128
        max_units = max(1, min(h_units, th_max // 128))
        cands = [d for d in range(max_units, 0, -1) if h_units % d == 0]
        TH = None
        for d in cands:
            if need_tiled(TM, d * 128) <= budget:
                TH = d * 128
                break
        if TH is None:
            TH = cands[-1] * 128
            while need_tiled(TM, TH) > budget and TM > tm_align:
                TM = max(tm_align, _round_up(TM // 2, tm_align))
        vmem_need = need_tiled(TM, TH)

    M_pad = _round_up(M, TM)

    # ----- pad / cast the activations (skip when already aligned) -----
    x2d = x.reshape(M, C)
    if M_pad != M or C_pad != C:
        x2d = jnp.pad(x2d, ((0, M_pad - M), (0, C_pad - C)))
    x2d = x2d.astype(jnp.bfloat16)

    weight_bytes = ((w1p.size + w2p.size) * 2 + (b1p.size + b2p.size) * 4)
    num_m_tiles = M_pad // TM
    weight_passes = 1 if use_resident else num_m_tiles
    cost = pl.CostEstimate(
        flops=4 * M * C * H,                      # two matmuls, 2*M*C*H flops each
        transcendentals=M * H,                    # one tanh per hidden element
        bytes_accessed=(M_pad * C_pad * 2                   # x tiles (bf16)
                        + M_pad * C_pad * out_isize          # output
                        + weight_passes * weight_bytes))     # weights (re)streamed

    vmem_limit = int(min(max(vmem_need + 8 * 1024 * 1024, 32 * 1024 * 1024),
                         vmem_cap - 4 * 1024 * 1024))
    vmem_limit = max(vmem_limit, int(vmem_need))

    if use_resident:
        grid = (num_m_tiles,)
        in_specs = [
            pl.BlockSpec((TM, C_pad), lambda i: (i, 0)),        # x rows
            pl.BlockSpec((C_pad, H_pad), lambda i: (0, 0)),     # w1 (resident)
            pl.BlockSpec((1, H_pad), lambda i: (0, 0)),         # b1 (resident)
            pl.BlockSpec((H_pad, C_pad), lambda i: (0, 0)),     # w2 (resident)
            pl.BlockSpec((1, C_pad), lambda i: (0, 0)),         # b2 (resident)
        ]
        out_specs = pl.BlockSpec((TM, C_pad), lambda i: (i, 0))
        scratch = []
        kernel = _mlp_kernel_resident
        dim_sem = ("parallel",)
    else:
        grid = (num_m_tiles, H_pad // TH)
        in_specs = [
            pl.BlockSpec((TM, C_pad), lambda i, j: (i, 0)),     # x rows (resident over j)
            pl.BlockSpec((C_pad, TH), lambda i, j: (0, j)),     # w1 column slice
            pl.BlockSpec((1, TH), lambda i, j: (0, j)),         # b1 slice
            pl.BlockSpec((TH, C_pad), lambda i, j: (j, 0)),     # w2 row slice
            pl.BlockSpec((1, C_pad), lambda i, j: (0, 0)),      # b2 (resident)
        ]
        out_specs = pl.BlockSpec((TM, C_pad), lambda i, j: (i, 0))
        scratch = [pltpu.VMEM((TM, C_pad), jnp.float32)]
        kernel = _mlp_kernel_tiled
        dim_sem = ("parallel", "arbitrary")

    out2d = pl.pallas_call(
        kernel,
        out_shape=jax.ShapeDtypeStruct((M_pad, C_pad), out_dtype),
        grid_spec=pltpu.PrefetchScalarGridSpec(
            num_scalar_prefetch=0,
            grid=grid,
            in_specs=in_specs,
            out_specs=out_specs,
            scratch_shapes=scratch,
        ),
        compiler_params=pltpu.CompilerParams(
            dimension_semantics=dim_sem,
            vmem_limit_bytes=vmem_limit,
        ),
        cost_estimate=cost,
    )(x2d, w1p, b1p, w2p, b2p)

    if M_pad != M or C_pad != C:
        out2d = out2d[:M, :C]
    return out2d.reshape(B, T, C)


def mlp_reference(x, w1, b1, w2, b2):
    h = jnp.dot(x, w1) + b1
    c = math.sqrt(2.0 / math.pi)
    g = 0.5 * h * (1.0 + jnp.tanh(c * (h + 0.044715 * h ** 3)))
    return jnp.dot(g, w2) + b2


if __name__ == "__main__":
    # Small GPT-2-like config: n_embd=32, hidden=4*32=128, batch=2, seq=8
    B, T, C = 2, 8, 32
    H = 4 * C

    key = jax.random.PRNGKey(0)
    kx, k1, k2, k3, k4 = jax.random.split(key, 5)

    x = jax.random.normal(kx, (B, T, C), dtype=jnp.float32)

    # Deterministic PyTorch-Linear-style init: U(-1/sqrt(fan_in), 1/sqrt(fan_in))
    bound1 = 1.0 / math.sqrt(C)
    w1 = jax.random.uniform(k1, (C, H), minval=-bound1, maxval=bound1, dtype=jnp.float32)
    b1 = jax.random.uniform(k2, (H,), minval=-bound1, maxval=bound1, dtype=jnp.float32)
    bound2 = 1.0 / math.sqrt(H)
    w2 = jax.random.uniform(k3, (H, C), minval=-bound2, maxval=bound2, dtype=jnp.float32)
    b2 = jax.random.uniform(k4, (C,), minval=-bound2, maxval=bound2, dtype=jnp.float32)

    # One-time weight preparation (pad + bf16 cast hoisted out of the per-call path).
    params = prepare_mlp_params(w1, b1, w2, b2)

    out = mlp_pallas(x, params)
    jax.block_until_ready(out)

    ref = mlp_reference(x, w1, b1, w2, b2)
    assert out.shape == (B, T, C)
    # Tolerance relaxed vs. the pure-f32 reference: matmul operands (x, w1, GELU
    # output, w2) run in bf16 on the MXU with f32 accumulation (~1e-3..1e-2 abs err).
    assert jnp.allclose(out, ref, atol=3e-2, rtol=3e-2), "mismatch vs reference"

    print("KERNEL_OK")
</pallas_src>

<mosaic_0001>
module attributes {stable_mosaic.version = 11 : i64} {
  func.func @_mlp_kernel_resident(%arg0: i32, %arg1: memref<16x128xbf16, #tpu.memory_space<vmem>>, %arg2: memref<128x128xbf16, #tpu.memory_space<vmem>>, %arg3: memref<1x128xf32, #tpu.memory_space<vmem>>, %arg4: memref<128x128xbf16, #tpu.memory_space<vmem>>, %arg5: memref<1x128xf32, #tpu.memory_space<vmem>>, %arg6: memref<16x128xf32, #tpu.memory_space<vmem>>) attributes {dimension_semantics = [#tpu.dimension_semantics<parallel>], iteration_bounds = array<i64: 1>, scalar_prefetch = 0 : i64, scratch_operands = 0 : i64, tpu.core_type = #tpu.core_type<tc>, window_params = [{transform_indices = @transform_0, window_bounds = array<i64: 16, 128>}, {pipeline_mode = #tpu.pipeline_mode<synchronous>, transform_indices = @transform_1, window_bounds = array<i64: 128, 128>}, {pipeline_mode = #tpu.pipeline_mode<synchronous>, transform_indices = @transform_2, window_bounds = array<i64: 1, 128>}, {pipeline_mode = #tpu.pipeline_mode<synchronous>, transform_indices = @transform_3, window_bounds = array<i64: 128, 128>}, {pipeline_mode = #tpu.pipeline_mode<synchronous>, transform_indices = @transform_4, window_bounds = array<i64: 1, 128>}, {transform_indices = @transform_5, window_bounds = array<i64: 16, 128>}]} {
    %c0 = arith.constant 0 : index
    %c0_0 = arith.constant 0 : index
    %0 = vector.load %arg1[%c0, %c0_0] : memref<16x128xbf16, #tpu.memory_space<vmem>>, vector<16x128xbf16>
    %c0_1 = arith.constant 0 : index
    %c0_2 = arith.constant 0 : index
    %1 = vector.load %arg2[%c0_1, %c0_2] : memref<128x128xbf16, #tpu.memory_space<vmem>>, vector<128x128xbf16>
    %cst = arith.constant dense<0.000000e+00> : vector<16x128xf32>
    %2 = tpu.matmul %0, %1, %cst {dimension_numbers = #tpu.dot_dimension_numbers<[1], [0], [0], [1], [0, 0, 1, 1], [], []>} : vector<16x128xbf16>, vector<128x128xbf16>, vector<16x128xf32> -> vector<16x128xf32>
    %c0_3 = arith.constant 0 : index
    %c0_4 = arith.constant 0 : index
    %3 = vector.load %arg3[%c0_3, %c0_4] : memref<1x128xf32, #tpu.memory_space<vmem>>, vector<1x128xf32>
    %4 = vector.broadcast %3 : vector<1x128xf32> to vector<16x128xf32>
    %5 = arith.addf %2, %4 : vector<16x128xf32>
    %6 = arith.mulf %5, %5 : vector<16x128xf32>
    %cst_5 = arith.constant 0.0356774069 : f32
    %7 = vector.broadcast %cst_5 : f32 to vector<16x128xf32>
    %8 = arith.mulf %7, %6 : vector<16x128xf32>
    %cst_6 = arith.constant 0.797884583 : f32
    %9 = vector.broadcast %cst_6 : f32 to vector<16x128xf32>
    %10 = arith.addf %9, %8 : vector<16x128xf32>
    %11 = arith.mulf %5, %10 : vector<16x128xf32>
    %12 = math.tanh %11 : vector<16x128xf32>
    %cst_7 = arith.constant 5.000000e-01 : f32
    %13 = vector.broadcast %cst_7 : f32 to vector<16x128xf32>
    %14 = arith.mulf %13, %12 : vector<16x128xf32>
    %cst_8 = arith.constant 5.000000e-01 : f32
    %15 = vector.broadcast %cst_8 : f32 to vector<16x128xf32>
    %16 = arith.addf %15, %14 : vector<16x128xf32>
    %17 = arith.mulf %5, %16 : vector<16x128xf32>
    %18 = arith.truncf %17 : vector<16x128xf32> to vector<16x128xbf16>
    %c0_9 = arith.constant 0 : index
    %c0_10 = arith.constant 0 : index
    %19 = vector.load %arg4[%c0_9, %c0_10] : memref<128x128xbf16, #tpu.memory_space<vmem>>, vector<128x128xbf16>
    %cst_11 = arith.constant dense<0.000000e+00> : vector<16x128xf32>
    %20 = tpu.matmul %18, %19, %cst_11 {dimension_numbers = #tpu.dot_dimension_numbers<[1], [0], [0], [1], [0, 0, 1, 1], [], []>} : vector<16x128xbf16>, vector<128x128xbf16>, vector<16x128xf32> -> vector<16x128xf32>
    %c0_12 = arith.constant 0 : index
    %c0_13 = arith.constant 0 : index
    %21 = vector.load %arg5[%c0_12, %c0_13] : memref<1x128xf32, #tpu.memory_space<vmem>>, vector<1x128xf32>
    %22 = vector.broadcast %21 : vector<1x128xf32> to vector<16x128xf32>
    %23 = arith.addf %20, %22 : vector<16x128xf32>
    %c0_14 = arith.constant 0 : index
    %c0_15 = arith.constant 0 : index
    %24 = vector.load %arg6[%c0_14, %c0_15] : memref<16x128xf32, #tpu.memory_space<vmem>>, vector<16x128xf32>
    tpu.vector_store %arg6[%c0_14, %c0_15], %23 {strides = array<i32>} : memref<16x128xf32, #tpu.memory_space<vmem>>, vector<16x128xf32>,
    return
  }
  func.func @transform_0(%arg0: i32) -> (i32, i32) {
    %c0_i32 = arith.constant 0 : i32
    %c0_i32_0 = arith.constant 0 : i32
    return %arg0, %c0_i32 : i32, i32
  }
  func.func @transform_1(%arg0: i32) -> (i32, i32) {
    %c0_i32 = arith.constant 0 : i32
    %c0_i32_0 = arith.constant 0 : i32
    %c0_i32_1 = arith.constant 0 : i32
    return %c0_i32, %c0_i32_0 : i32, i32
  }
  func.func @transform_2(%arg0: i32) -> (i32, i32) {
    %c0_i32 = arith.constant 0 : i32
    %c0_i32_0 = arith.constant 0 : i32
    %c0_i32_1 = arith.constant 0 : i32
    return %c0_i32, %c0_i32_0 : i32, i32
  }
  func.func @transform_3(%arg0: i32) -> (i32, i32) {
    %c0_i32 = arith.constant 0 : i32
    %c0_i32_0 = arith.constant 0 : i32
    %c0_i32_1 = arith.constant 0 : i32
    return %c0_i32, %c0_i32_0 : i32, i32
  }
  func.func @transform_4(%arg0: i32) -> (i32, i32) {
    %c0_i32 = arith.constant 0 : i32
    %c0_i32_0 = arith.constant 0 : i32
    %c0_i32_1 = arith.constant 0 : i32
    return %c0_i32, %c0_i32_0 : i32, i32
  }
  func.func @transform_5(%arg0: i32) -> (i32, i32) {
    %c0_i32 = arith.constant 0 : i32
    %c0_i32_0 = arith.constant 0 : i32
    return %arg0, %c0_i32 : i32, i32
  }
}

</mosaic_0001>

<bundles_post_ra>
// kernel: tpu_custom_call.1
= control target key start
LH: loop header
LB: loop body
LE: loop exit
PB: predicated region body
PF: predicated region fallthrough
CT: control target
= control target key end

     0   :  { %10 = vsyncpa [#allocation3], 0  ;;  %s644_s0 = inlined_call_operand.hbm [shape: bf16[16,128], index: 0, kind: input, shape index: {}]   ;;  %s645_s1 = inlined_call_operand.hbm [shape: bf16[128,128], index: 1, kind: input, shape index: {}]   ;;  %s646_s2 = inlined_call_operand.vmem [shape: f32[1,128], index: 2, kind: input, shape index: {}]   ;;  %s647_s3 = inlined_call_operand.hbm [shape: bf16[128,128], index: 3, kind: input, shape index: {}]   ;;  %s648_s4 = inlined_call_operand.vmem [shape: f32[1,128], index: 4, kind: input, shape index: {}]   ;;  %s649_s5 = inlined_call_operand.hbm [shape: f32[16,128], index: 5, kind: output, shape index: {}]  }
   0x1   :  { %11 = vsyncpa [#allocation6], 0 }
   0x2   :  { %12 = vsyncpa [#allocation4], 0  ;;  %s534_s18 = smov [#allocation5]   ;;  %s535_s20 = smov [#allocation2]  }
   0x3   :  { %s30_s19 = sshll.u32 %s534_s18, 4  ;;  %s18_s21 = sshll.u32 %s535_s20, 4  ;;  %s31_s19 = int_to_ptr.vmem [resolvable:$true] %s30_s19  ;;  %s574_s21 = int_to_ptr.vmem [resolvable:$true] %s18_s21 }
   0x4   :  { %s440_s24 = scalar_lea.hbm %s645_s1, 1024 }
   0x5   :  { %p441_p0 = scmp.ne.s32.totalorder %s645_s1, %s440_s24  ;;  %p444_p1 = scmp.lt.u32.totalorder %s440_s24, %s645_s1 }
   0x7   :  { %p446_p2 = pnand %p444_p1, %p441_p0 }
   0x9   :  { %449 = shalt.err (!%p446_p2)
}
   0xa   :  { %s450_s29 = scalar_lea.vmem %s31_s19, 1024  ;;  %p455_p4 = scmp.lt.s32.totalorder %s31_s19, %s31_s19 }
   0xb   :  { %p451_p3 = scmp.ne.s32.totalorder %s31_s19, %s450_s29  ;;  %p456_p5 = scmp.lt.s32.totalorder %s450_s29, %s450_s29 }
   0xd   :  { %p457_p6 = por %p456_p5, %p455_p4 }
   0xf   :  { %p458_p7 = pnand %p457_p6, %p451_p3 }
  0x11   :  { %461 = shalt.err (!%p458_p7)
}
  0x12   :  { %s536_s30 = smov 64   ;;  %s537_s6 = smov 4  }
  0x13   :  { %36 = dma.hbm_to_vmem [thread:$0]  %s645_s1, 1024, %s31_s19, [#allocation6], %s536_s30, %s536_s30, %s537_s6  }
  0x14   :  { %s462_s11 = scalar_lea.hbm %s644_s0, 128 }
  0x15   :  { %p463_p8 = scmp.ne.s32.totalorder %s644_s0, %s462_s11  ;;  %p466_p9 = scmp.lt.u32.totalorder %s462_s11, %s644_s0 }
  0x17   :  { %p468_p10 = pnand %p466_p9, %p463_p8 }
  0x19   :  { %471 = shalt.err (!%p468_p10)
}
  0x1a   :  { %s472_s16 = scalar_lea.vmem %s574_s21, 128  ;;  %p477_p12 = scmp.lt.s32.totalorder %s574_s21, %s574_s21 }
  0x1b   :  { %p473_p11 = scmp.ne.s32.totalorder %s574_s21, %s472_s16  ;;  %p478_p13 = scmp.lt.s32.totalorder %s472_s16, %s472_s16 }
  0x1d   :  { %p479_p0 = por %p478_p13, %p477_p12 }
  0x1f   :  { %p480_p1 = pnand %p479_p0, %p473_p11 }
  0x21   :  { %483 = shalt.err (!%p480_p1)
}
  0x22   :  { %24 = dma.hbm_to_vmem [thread:$0]  %s644_s0, 128, %s574_s21, [#allocation3], %s536_s30, %s536_s30, %s537_s6  }
  0x23   :  { %s538_s18 = smov [#allocation7]   ;;  %s484_s23 = scalar_lea.hbm %s647_s3, 1024 }
  0x24   :  { %s44_s19 = sshll.u32 %s538_s18, 4  ;;  %p485_p2 = scmp.ne.s32.totalorder %s647_s3, %s484_s23  ;;  %s45_s19 = int_to_ptr.vmem [resolvable:$true] %s44_s19 }
  0x25   :  { %p488_p3 = scmp.lt.u32.totalorder %s484_s23, %s647_s3 }
  0x27   :  { %p490_p4 = pnand %p488_p3, %p485_p2 }
  0x29   :  { %493 = shalt.err (!%p490_p4)
}
  0x2a   :  { %s494_s28 = scalar_lea.vmem %s45_s19, 1024  ;;  %p499_p6 = scmp.lt.s32.totalorder %s45_s19, %s45_s19 }
  0x2b   :  { %p495_p5 = scmp.ne.s32.totalorder %s45_s19, %s494_s28  ;;  %p500_p7 = scmp.lt.s32.totalorder %s494_s28, %s494_s28 }
  0x2d   :  { %p501_p8 = por %p500_p7, %p499_p6 }
  0x2f   :  { %p502_p9 = pnand %p501_p8, %p495_p5 }
  0x31   :  { %505 = shalt.err (!%p502_p9)
}
  0x32   :  { %50 = dma.hbm_to_vmem [thread:$0]  %s647_s3, 1024, %s45_s19, [#allocation6], %s536_s30, %s536_s30, %s537_s6  }
  0x33   :  { %528 = dma.done.wait [#allocation3], 128  }
  0x34   :  { %529 = vsyncadd [#allocation3], 4294967168 }
  0x35   :  { %530 = dma.done.wait [#allocation6], 2048  }
  0x36   :  { %531 = vsyncadd [#allocation6], 4294965248  ;;  %v539_v0 = vmov 0.0   ;;  %vm540_vm0 = vmmov 0   ;;  %v419_v1 = vld [vmem:[#allocation5] sm:$0xff]   ;;  %v420_v2 = vld [vmem:[#allocation5 + $0x8] sm:$0xff]  }
  0x37   :  { %369 = vmatprep.subr.bf16.mxu0 %v539_v0  ;;  %385 = vmatprep.mubr.msk.bf16.mxu0 %vm540_vm0, %v539_v0  ;;  %v421_v3 = vld [vmem:[#allocation5 + $0x10] sm:$0xff]   ;;  %v422_v4 = vld [vmem:[#allocation5 + $0x18] sm:$0xff]   ;;  %v423_v5 = vld [vmem:[#allocation5 + $0x20] sm:$0xff]   ;;  %s541_s6 = smov [#allocation8]  }
  0x38   :  { %389 = vmatprep.subr.bf16.mxu1 %v539_v0  ;;  %405 = vmatprep.mubr.msk.bf16.mxu1 %vm540_vm0, %v539_v0  ;;  %v424_v6 = vld [vmem:[#allocation5 + $0x28] sm:$0xff]   ;;  %v425_v7 = vld [vmem:[#allocation5 + $0x30] sm:$0xff]   ;;  %v426_v8 = vld [vmem:[#allocation5 + $0x38] sm:$0xff]   ;;  %s319_s7 = sshll.u32 %s541_s6, 4  ;;  %s320_s7 = int_to_ptr.vmem [resolvable:$true] %s319_s7 }
  0x39   :  { %370 = vmatpush3.bf16.msra.mxu0 %v419_v1  ;;  %v427_v9 = vld [vmem:[#allocation2] sm:$0xff]   ;;  %v428_v10 = vld [vmem:[#allocation7] sm:$0xff]   ;;  %v429_v11 = vld [vmem:[#allocation7 + $0x8] sm:$0xff]   ;;  %s506_s8 = scalar_lea.vmem %s320_s7, 256  ;;  %p511_p11 = scmp.lt.s32.totalorder %s320_s7, %s320_s7 }
  0x3a   :  { %371 = vmatprep.subr.bf16.mxu0 %v539_v0  ;;  %390 = vmatpush3.bf16.msra.mxu1 %v428_v10  ;;  %v430_v12 = vld [vmem:[#allocation7 + $0x10] sm:$0xff]   ;;  %v431_v13 = vld [vmem:[#allocation7 + $0x18] sm:$0xff]   ;;  %v432_v14 = vld [vmem:[#allocation7 + $0x20] sm:$0xff]   ;;  %p507_p10 = scmp.ne.s32.totalorder %s320_s7, %s506_s8  ;;  %p512_p12 = scmp.lt.s32.totalorder %s506_s8, %s506_s8 }
  0x3b   :  { %391 = vmatprep.subr.bf16.mxu1 %v539_v0  ;;  %v433_v15 = vld [vmem:[#allocation7 + $0x28] sm:$0xff]   ;;  %v434_v16 = vld [vmem:[#allocation7 + $0x30] sm:$0xff]   ;;  %v435_v17 = vld [vmem:[#allocation7 + $0x38] sm:$0xff]  }
  0x3c   :  { %v332_v18 = vld [vmem:[%s646_s2] ss:$0 sm:$0xff]  ;;  %p513_p13 = por %p512_p12, %p511_p11 }
  0x3d   :  { %372 = vmatpush3.bf16.msra.mxu0 %v420_v2  ;;  %v342_v42 = vld [vmem:[%s648_s4] ss:$0 sm:$0xff] }
  0x3e   :  { %373 = vmatprep.subr.bf16.mxu0 %v539_v0  ;;  %392 = vmatpush3.bf16.msra.mxu1 %v429_v11  ;;  %p514_p0 = pnand %p513_p13, %p507_p10 }
  0x3f   :  { %393 = vmatprep.subr.bf16.mxu1 %v539_v0 }
  0x41   :  { %374 = vmatpush3.bf16.msra.mxu0 %v421_v3 }
  0x42   :  { %375 = vmatprep.subr.bf16.mxu0 %v539_v0  ;;  %394 = vmatpush3.bf16.msra.mxu1 %v430_v12 }
  0x43   :  { %395 = vmatprep.subr.bf16.mxu1 %v539_v0 }
  0x45   :  { %376 = vmatpush3.bf16.msra.mxu0 %v422_v4 }
  0x46   :  { %377 = vmatprep.subr.bf16.mxu0 %v539_v0  ;;  %396 = vmatpush3.bf16.msra.mxu1 %v431_v13 }
  0x47   :  { %397 = vmatprep.subr.bf16.mxu1 %v539_v0 }
  0x49   :  { %378 = vmatpush3.bf16.msra.mxu0 %v423_v5 }
  0x4a   :  { %379 = vmatprep.subr.bf16.mxu0 %v539_v0  ;;  %398 = vmatpush3.bf16.msra.mxu1 %v432_v14 }
  0x4b   :  { %399 = vmatprep.subr.bf16.mxu1 %v539_v0 }
  0x4d   :  { %380 = vmatpush3.bf16.msra.mxu0 %v424_v6 }
  0x4e   :  { %381 = vmatprep.subr.bf16.mxu0 %v539_v0  ;;  %400 = vmatpush3.bf16.msra.mxu1 %v433_v15 }
  0x4f   :  { %401 = vmatprep.subr.bf16.mxu1 %v539_v0 }
  0x51   :  { %382 = vmatpush3.bf16.msra.mxu0 %v425_v7 }
  0x52   :  { %383 = vmatprep.subr.bf16.mxu0 %v539_v0  ;;  %402 = vmatpush3.bf16.msra.mxu1 %v434_v16 }
  0x53   :  { %403 = vmatprep.subr.bf16.mxu1 %v539_v0 }
  0x55   :  { %384 = vmatpush3.bf16.msra.mxu0 %v426_v8 }
  0x56   :  { %404 = vmatpush3.bf16.msra.mxu1 %v435_v17 }
  0x58   :  { %386 = vmatmul.mubr.bf16.vlgmr.msra.gmra.mrb[0].mxu0 %v427_v9 }
 0x12b   :  { %v176_v19 = vpop.f32.mrb[0].mxu0 }
 0x12c   :  { %v177_v20 = vadd.f32 %v332_v18, %v176_v19  ;;  %v387_v21 = vpop.f32.mrb[1].mxu0 }
 0x12d   :  { %v179_v22 = vpop.f32.mrb[2].mxu0 }
 0x12e   :  { %v183_v23 = vmul.f32 %v177_v20, %v177_v20  ;;  %v180_v24 = vadd.f32 %v332_v18, %v179_v22  ;;  %v388_v25 = vpop.f32.mrb[3].mxu0 }
 0x130   :  { %v185_v26 = vmul.f32 0.035677407, %v183_v23  ;;  %v184_v27 = vmul.f32 %v180_v24, %v180_v24 }
 0x132   :  { %v187_v28 = vadd.f32 0.7978846, %v185_v26  ;;  %v186_v29 = vmul.f32 0.035677407, %v184_v27 }
 0x134   :  { %v189_v30 = vmul.f32 %v187_v28, %v177_v20  ;;  %v188_v31 = vadd.f32 0.7978846, %v186_v29 }
 0x136   :  { %436 = vtanh.f32 %v189_v30  ;;  %v190_v32 = vmul.f32 %v188_v31, %v180_v24 }
 0x138   :  { %438 = vtanh.f32 %v190_v32 }
 0x140   :  { %v437_v33 = vpop.eup %436 }
 0x141   :  { %v193_v34 = vmul.f32 0.5, %v437_v33 }
 0x142   :  { %v439_v35 = vpop.eup %438 }
 0x143   :  { %v195_v36 = vadd.f32 0.5, %v193_v34  ;;  %v194_v37 = vmul.f32 0.5, %v439_v35 }
 0x145   :  { %v196_v38 = vadd.f32 0.5, %v194_v37  ;;  %v197_v39 = vmul.f32 %v195_v36, %v177_v20 }
 0x147   :  { %v198_v40 = vmul.f32 %v196_v38, %v180_v24 }
 0x149   :  { %v199_v41 = vpack.c.bf16 %v198_v40, %v197_v39 }
 0x14b   :  { %406 = vmatmul.mubr.bf16.vlgmr.msra.gmra.mrb[0].mxu1 %v199_v41 }
 0x21e   :  { %v305_v43 = vpop.f32.mrb[0].mxu1 }
 0x21f   :  { %v306_v44 = vadd.f32 %v342_v42, %v305_v43  ;;  %v407_v45 = vpop.f32.mrb[1].mxu1 }
 0x220   :  { %v308_v46 = vpop.f32.mrb[2].mxu1 }
 0x221   :  { %312 = vst [vmem:[#allocation8] sm:$0xff] %v306_v44  ;;  %v309_v47 = vadd.f32 %v342_v42, %v308_v46  ;;  %v408_v48 = vpop.f32.mrb[3].mxu1 }
 0x223   :  { %313 = vst [vmem:[#allocation8 + $0x8] sm:$0xff] %v309_v47 }
 0x224   :  { %517 = shalt.err (!%p514_p0)
}
 0x225   :  { %s518_s10 = scalar_lea.hbm %s649_s5, 256 }
 0x226   :  { %p519_p1 = scmp.ne.s32.totalorder %s649_s5, %s518_s10  ;;  %p522_p2 = scmp.lt.u32.totalorder %s518_s10, %s649_s5 }
 0x228   :  { %p524_p3 = pnand %p522_p2, %p519_p1 }
 0x22a   :  { %527 = shalt.err (!%p524_p3)
}
 0x22b   :  { %s542_s15 = smov 128   ;;  %s543_s16 = smov 8  }
 0x22c   :  { %325 = dma.vmem_to_hbm [thread:$0]  %s320_s7, 256, %s649_s5, [#allocation4], %s542_s15, %s542_s15, %s543_s16  }
 0x22d   :  { %532 = dma.done.wait [#allocation4], 256  }
 0x22e   :  { %533 = vsyncadd [#allocation4], 4294967040 }
 0x22f   :  { %329 = vsyncpa [#allocation3], 1 }
 0x230   :  { %330 = vsyncpa [#allocation6], 1 }
 0x231   :  { %331 = vsyncpa [#allocation4], 1 }

</bundles_post_ra>
